<compile_context>
chip_gen: v6e
topology: v6e:2x2x1
jax: 0.10.0
libtpu: 0.0.40
codegen_flags: <defaults>
</compile_context>

<pallas_src>
import jax
import jax.numpy as jnp
from jax.experimental import pallas as pl
from jax.experimental.pallas import tpu as pltpu


def _encoder_gru_kernel(tok_ref, emb_ref, wih_ref, whh_ref, bcomb_ref, bhn_ref,
                        h0_ref, out_ref, hn_ref, gi_scratch):
    """Single-invocation EncoderRNN forward.

    tok_ref   : (T*B, 1) int32, time-major flattened token ids
    emb_ref   : (V, E)   embedding table
    wih_ref   : (E, 3H)  input-to-hidden weights, transposed, gates [r|z|n]
    whh_ref   : (H, 3H)  hidden-to-hidden weights, transposed
    bcomb_ref : (1, 3H)  b_ih with the r/z slices of b_hh folded in
    bhn_ref   : (1, H)   n-gate slice of b_hh
    h0_ref    : (B, H)   initial hidden state
    out_ref   : (B, T, H) batch_first output
    hn_ref    : (B, H)   final hidden state
    gi_scratch: (T*B, 3H) VMEM scratch holding the hoisted input projection
    """
    TB = tok_ref.shape[0]
    V, _ = emb_ref.shape
    H = whh_ref.shape[0]
    B, T, _ = out_ref.shape

    # --- fused embedding lookup: one-hot(tokens) @ table -------------------
    # Exact row selection (each product is x*1 or x*0); keeps the embedded
    # activations out of HBM entirely and feeds the MXU.
    tok = tok_ref[...]                                            # (T*B, 1)
    vocab_ids = jax.lax.broadcasted_iota(jnp.int32, (TB, V), 1)   # (T*B, V)
    onehot = (tok == vocab_ids).astype(jnp.float32)               # (T*B, V)
    x_all = jnp.dot(onehot, emb_ref[...],
                    preferred_element_type=jnp.float32)           # (T*B, E)

    # --- hoisted, time-independent input projection (one big MXU matmul) ---
    gi_scratch[...] = (jnp.dot(x_all, wih_ref[...],
                               preferred_element_type=jnp.float32)
                       + bcomb_ref[...])                          # (T*B, 3H)

    whh = whh_ref[...]                                            # (H, 3H)
    bhn = bhn_ref[...]                                            # (1, H)
    h = h0_ref[...]                                               # (B, H)

    # --- sequential recurrence: only h @ W_hh^T remains per step -----------
    # T is small and static -> fully unrolled; all per-step stores are
    # VMEM-side; the HBM writeback of out_ref happens once at kernel end.
    for t in range(T):
        gi = gi_scratch[t * B:(t + 1) * B, :]                     # (B, 3H)
        gh = jnp.dot(h, whh, preferred_element_type=jnp.float32)  # (B, 3H)
        r = jax.nn.sigmoid(gi[:, :H] + gh[:, :H])
        z = jax.nn.sigmoid(gi[:, H:2 * H] + gh[:, H:2 * H])
        n = jnp.tanh(gi[:, 2 * H:] + r * (gh[:, 2 * H:] + bhn))
        h = (1.0 - z) * n + z * h
        out_ref[:, t:t + 1, :] = h[:, None, :].astype(out_ref.dtype)

    hn_ref[...] = h.astype(hn_ref.dtype)                          # written once


@jax.jit
def encoder_rnn_forward(tokens, emb_table, w_ih, w_hh, b_ih, b_hh, h0):
    """EncoderRNN.forward(x, h): returns (output (B,T,H), h_n (1,B,H))."""
    B, T = tokens.shape
    V, E = emb_table.shape
    H = w_hh.shape[1]

    # Parameter preprocessing (transposes / bias folding): a couple of tiny
    # one-time ops per call, fused by XLA.
    wih_t = jnp.asarray(w_ih, jnp.float32).T                      # (E, 3H)
    whh_t = jnp.asarray(w_hh, jnp.float32).T                      # (H, 3H)
    b_ih_f = jnp.asarray(b_ih, jnp.float32)
    b_hh_f = jnp.asarray(b_hh, jnp.float32)
    b_comb = (b_ih_f + jnp.concatenate(
        [b_hh_f[:2 * H], jnp.zeros((H,), jnp.float32)]))[None, :]  # (1, 3H)
    b_hn = b_hh_f[2 * H:][None, :]                                 # (1, H)

    # Time-major flattened token ids: row t*B + b holds tokens[b, t].
    tok_tm = tokens.astype(jnp.int32).T.reshape(T * B, 1)

    vmem = pl.BlockSpec(memory_space=pltpu.MemorySpace.VMEM)
    output, h_n = pl.pallas_call(
        _encoder_gru_kernel,
        out_shape=(
            jax.ShapeDtypeStruct((B, T, H), jnp.float32),
            jax.ShapeDtypeStruct((B, H), jnp.float32),
        ),
        in_specs=[vmem] * 7,
        out_specs=(vmem, vmem),
        scratch_shapes=[pltpu.VMEM((T * B, 3 * H), jnp.float32)],
    )(tok_tm, emb_table.astype(jnp.float32), wih_t, whh_t, b_comb, b_hn,
      h0[0].astype(jnp.float32))

    return output, h_n[None, :, :]                                 # h_n: (1, B, H)


def _reference_gru(tokens, emb_table, w_ih, w_hh, b_ih, b_hh, h0):
    """Pure-JAX reference matching torch.nn.GRU(batch_first=True) semantics."""
    emb = jnp.take(emb_table, tokens, axis=0)          # (B, T, E)
    H = w_hh.shape[1]

    def step(h, x_t):                                  # h: (B,H), x_t: (B,E)
        gi = x_t @ w_ih.T + b_ih
        gh = h @ w_hh.T + b_hh
        i_r, i_z, i_n = gi[:, :H], gi[:, H:2 * H], gi[:, 2 * H:]
        h_r, h_z, h_n = gh[:, :H], gh[:, H:2 * H], gh[:, 2 * H:]
        r = jax.nn.sigmoid(i_r + h_r)
        z = jax.nn.sigmoid(i_z + h_z)
        n = jnp.tanh(i_n + r * h_n)
        h_new = (1.0 - z) * n + z * h
        return h_new, h_new

    x_tbe = jnp.transpose(emb, (1, 0, 2))              # (T, B, E)
    h_last, out_tbh = jax.lax.scan(step, h0[0], x_tbe)
    return jnp.transpose(out_tbh, (1, 0, 2)), h_last[None]


if __name__ == "__main__":
    # Module hyperparameters: EncoderRNN(vs, es, hs, nl=1)
    V, E, H = 50, 32, 32      # vocab, embedding size, hidden size
    B, T = 2, 8               # batch, sequence length

    key = jax.random.PRNGKey(0)
    k_emb, k_wih, k_whh, k_bih, k_bhh, k_tok = jax.random.split(key, 6)

    # Deterministic parameter init mimicking PyTorch defaults:
    #   nn.Embedding: N(0, 1);  nn.GRU: U(-1/sqrt(H), 1/sqrt(H)).
    bound = 1.0 / (H ** 0.5)
    emb_table = jax.random.normal(k_emb, (V, E), jnp.float32)
    w_ih = jax.random.uniform(k_wih, (3 * H, E), jnp.float32, -bound, bound)
    w_hh = jax.random.uniform(k_whh, (3 * H, H), jnp.float32, -bound, bound)
    b_ih = jax.random.uniform(k_bih, (3 * H,), jnp.float32, -bound, bound)
    b_hh = jax.random.uniform(k_bhh, (3 * H,), jnp.float32, -bound, bound)

    tokens = jax.random.randint(k_tok, (B, T), 0, V, jnp.int32)
    h0 = jnp.zeros((1, B, H), jnp.float32)             # default h=None -> zeros

    output, h_n = encoder_rnn_forward(tokens, emb_table, w_ih, w_hh,
                                      b_ih, b_hh, h0)
    output = jax.block_until_ready(output)
    h_n = jax.block_until_ready(h_n)

    # Correctness check against a pure-JAX scan reference.
    ref_out, ref_hn = _reference_gru(tokens, emb_table, w_ih, w_hh,
                                     b_ih, b_hh, h0)
    assert output.shape == (B, T, H) and h_n.shape == (1, B, H)
    assert jnp.allclose(output, ref_out, atol=1e-5, rtol=1e-5)
    assert jnp.allclose(h_n, ref_hn, atol=1e-5, rtol=1e-5)

    print("KERNEL_OK")
</pallas_src>

<mosaic_0001>
module attributes {stable_mosaic.version = 11 : i64} {
  func.func @_encoder_gru_kernel(%arg0: memref<16x1xi32, #tpu.memory_space<vmem>>, %arg1: memref<50x32xf32, #tpu.memory_space<vmem>>, %arg2: memref<32x96xf32, #tpu.memory_space<vmem>>, %arg3: memref<32x96xf32, #tpu.memory_space<vmem>>, %arg4: memref<1x96xf32, #tpu.memory_space<vmem>>, %arg5: memref<1x32xf32, #tpu.memory_space<vmem>>, %arg6: memref<2x32xf32, #tpu.memory_space<vmem>>, %arg7: memref<2x8x32xf32, #tpu.memory_space<vmem>>, %arg8: memref<2x32xf32, #tpu.memory_space<vmem>>, %arg9: memref<16x96xf32, #tpu.memory_space<vmem>>) attributes {dimension_semantics = [], scalar_prefetch = 0 : i64, scratch_operands = 1 : i64, tpu.core_type = #tpu.core_type<tc>} {
    %c0 = arith.constant 0 : index
    %c0_0 = arith.constant 0 : index
    %0 = vector.load %arg0[%c0, %c0_0] : memref<16x1xi32, #tpu.memory_space<vmem>>, vector<16x1xi32>
    %1 = tpu.iota {dimensions = array<i32: 1>} : vector<16x50xi32>
    %2 = vector.broadcast %0 : vector<16x1xi32> to vector<16x50xi32>
    %3 = arith.cmpi eq, %2, %1 : vector<16x50xi32>
    %4 = arith.extui %3 : vector<16x50xi1> to vector<16x50xi32>
    %5 = arith.sitofp %4 : vector<16x50xi32> to vector<16x50xf32>
    %c0_1 = arith.constant 0 : index
    %c0_2 = arith.constant 0 : index
    %6 = vector.load %arg1[%c0_1, %c0_2] : memref<50x32xf32, #tpu.memory_space<vmem>>, vector<50x32xf32>
    %cst = arith.constant dense<0.000000e+00> : vector<16x32xf32>
    %7 = tpu.matmul %5, %6, %cst {dimension_numbers = #tpu.dot_dimension_numbers<[1], [0], [0], [1], [0, 0, 1, 1], [], []>} : vector<16x50xf32>, vector<50x32xf32>, vector<16x32xf32> -> vector<16x32xf32>
    %c0_3 = arith.constant 0 : index
    %c0_4 = arith.constant 0 : index
    %8 = vector.load %arg2[%c0_3, %c0_4] : memref<32x96xf32, #tpu.memory_space<vmem>>, vector<32x96xf32>
    %cst_5 = arith.constant dense<0.000000e+00> : vector<16x96xf32>
    %9 = tpu.matmul %7, %8, %cst_5 {dimension_numbers = #tpu.dot_dimension_numbers<[1], [0], [0], [1], [0, 0, 1, 1], [], []>} : vector<16x32xf32>, vector<32x96xf32>, vector<16x96xf32> -> vector<16x96xf32>
    %c0_6 = arith.constant 0 : index
    %c0_7 = arith.constant 0 : index
    %10 = vector.load %arg4[%c0_6, %c0_7] : memref<1x96xf32, #tpu.memory_space<vmem>>, vector<1x96xf32>
    %11 = vector.broadcast %10 : vector<1x96xf32> to vector<16x96xf32>
    %12 = arith.addf %9, %11 : vector<16x96xf32>
    %c0_8 = arith.constant 0 : index
    %c0_9 = arith.constant 0 : index
    %13 = vector.load %arg9[%c0_8, %c0_9] : memref<16x96xf32, #tpu.memory_space<vmem>>, vector<16x96xf32>
    tpu.vector_store %arg9[%c0_8, %c0_9], %12 {strides = array<i32>} : memref<16x96xf32, #tpu.memory_space<vmem>>, vector<16x96xf32>,
    %c0_10 = arith.constant 0 : index
    %c0_11 = arith.constant 0 : index
    %14 = vector.load %arg3[%c0_10, %c0_11] : memref<32x96xf32, #tpu.memory_space<vmem>>, vector<32x96xf32>
    %c0_12 = arith.constant 0 : index
    %c0_13 = arith.constant 0 : index
    %15 = vector.load %arg5[%c0_12, %c0_13] : memref<1x32xf32, #tpu.memory_space<vmem>>, vector<1x32xf32>
    %c0_14 = arith.constant 0 : index
    %c0_15 = arith.constant 0 : index
    %16 = vector.load %arg6[%c0_14, %c0_15] : memref<2x32xf32, #tpu.memory_space<vmem>>, vector<2x32xf32>
    %c0_16 = arith.constant 0 : index
    %c0_17 = arith.constant 0 : index
    %17 = vector.load %arg9[%c0_16, %c0_17] : memref<16x96xf32, #tpu.memory_space<vmem>>, vector<2x96xf32>
    %cst_18 = arith.constant dense<0.000000e+00> : vector<2x96xf32>
    %18 = tpu.matmul %16, %14, %cst_18 {dimension_numbers = #tpu.dot_dimension_numbers<[1], [0], [0], [1], [0, 0, 1, 1], [], []>} : vector<2x32xf32>, vector<32x96xf32>, vector<2x96xf32> -> vector<2x96xf32>
    %19 = vector.extract_strided_slice %17 {offsets = [0, 0], sizes = [2, 32], strides = [1, 1]} : vector<2x96xf32> to vector<2x32xf32>
    %20 = vector.extract_strided_slice %18 {offsets = [0, 0], sizes = [2, 32], strides = [1, 1]} : vector<2x96xf32> to vector<2x32xf32>
    %21 = arith.addf %19, %20 : vector<2x32xf32>
    %22 = arith.negf %21 : vector<2x32xf32>
    %23 = math.exp %22 : vector<2x32xf32>
    %cst_19 = arith.constant 1.000000e+00 : f32
    %24 = vector.broadcast %cst_19 : f32 to vector<2x32xf32>
    %25 = arith.addf %24, %23 : vector<2x32xf32>
    %26 = arith.divf %24, %25 : vector<2x32xf32>
    %27 = vector.extract_strided_slice %17 {offsets = [0, 32], sizes = [2, 32], strides = [1, 1]} : vector<2x96xf32> to vector<2x32xf32>
    %28 = vector.extract_strided_slice %18 {offsets = [0, 32], sizes = [2, 32], strides = [1, 1]} : vector<2x96xf32> to vector<2x32xf32>
    %29 = arith.addf %27, %28 : vector<2x32xf32>
    %30 = arith.negf %29 : vector<2x32xf32>
    %31 = math.exp %30 : vector<2x32xf32>
    %cst_20 = arith.constant 1.000000e+00 : f32
    %32 = vector.broadcast %cst_20 : f32 to vector<2x32xf32>
    %33 = arith.addf %32, %31 : vector<2x32xf32>
    %34 = arith.divf %32, %33 : vector<2x32xf32>
    %35 = vector.extract_strided_slice %17 {offsets = [0, 64], sizes = [2, 32], strides = [1, 1]} : vector<2x96xf32> to vector<2x32xf32>
    %36 = vector.extract_strided_slice %18 {offsets = [0, 64], sizes = [2, 32], strides = [1, 1]} : vector<2x96xf32> to vector<2x32xf32>
    %37 = vector.broadcast %15 : vector<1x32xf32> to vector<2x32xf32>
    %38 = arith.addf %36, %37 : vector<2x32xf32>
    %39 = arith.mulf %26, %38 : vector<2x32xf32>
    %40 = arith.addf %35, %39 : vector<2x32xf32>
    %41 = math.tanh %40 : vector<2x32xf32>
    %cst_21 = arith.constant 1.000000e+00 : f32
    %42 = vector.broadcast %cst_21 : f32 to vector<2x32xf32>
    %43 = arith.subf %42, %34 : vector<2x32xf32>
    %44 = arith.mulf %43, %41 : vector<2x32xf32>
    %45 = arith.mulf %34, %16 : vector<2x32xf32>
    %46 = arith.addf %44, %45 : vector<2x32xf32>
    %47 = vector.shape_cast %46 : vector<2x32xf32> to vector<2x1x32xf32>
    %c0_22 = arith.constant 0 : index
    %c0_23 = arith.constant 0 : index
    %c0_24 = arith.constant 0 : index
    %48 = vector.load %arg7[%c0_22, %c0_23, %c0_24] : memref<2x8x32xf32, #tpu.memory_space<vmem>>, vector<2x1x32xf32>
    tpu.vector_store %arg7[%c0_22, %c0_23, %c0_24], %47 {strides = array<i32>} : memref<2x8x32xf32, #tpu.memory_space<vmem>>, vector<2x1x32xf32>,
    %c2 = arith.constant 2 : index
    %c0_25 = arith.constant 0 : index
    %49 = vector.load %arg9[%c2, %c0_25] : memref<16x96xf32, #tpu.memory_space<vmem>>, vector<2x96xf32>
    %cst_26 = arith.constant dense<0.000000e+00> : vector<2x96xf32>
    %50 = tpu.matmul %46, %14, %cst_26 {dimension_numbers = #tpu.dot_dimension_numbers<[1], [0], [0], [1], [0, 0, 1, 1], [], []>} : vector<2x32xf32>, vector<32x96xf32>, vector<2x96xf32> -> vector<2x96xf32>
    %51 = vector.extract_strided_slice %49 {offsets = [0, 0], sizes = [2, 32], strides = [1, 1]} : vector<2x96xf32> to vector<2x32xf32>
    %52 = vector.extract_strided_slice %50 {offsets = [0, 0], sizes = [2, 32], strides = [1, 1]} : vector<2x96xf32> to vector<2x32xf32>
    %53 = arith.addf %51, %52 : vector<2x32xf32>
    %54 = arith.negf %53 : vector<2x32xf32>
    %55 = math.exp %54 : vector<2x32xf32>
    %cst_27 = arith.constant 1.000000e+00 : f32
    %56 = vector.broadcast %cst_27 : f32 to vector<2x32xf32>
    %57 = arith.addf %56, %55 : vector<2x32xf32>
    %58 = arith.divf %56, %57 : vector<2x32xf32>
    %59 = vector.extract_strided_slice %49 {offsets = [0, 32], sizes = [2, 32], strides = [1, 1]} : vector<2x96xf32> to vector<2x32xf32>
    %60 = vector.extract_strided_slice %50 {offsets = [0, 32], sizes = [2, 32], strides = [1, 1]} : vector<2x96xf32> to vector<2x32xf32>
    %61 = arith.addf %59, %60 : vector<2x32xf32>
    %62 = arith.negf %61 : vector<2x32xf32>
    %63 = math.exp %62 : vector<2x32xf32>
    %cst_28 = arith.constant 1.000000e+00 : f32
    %64 = vector.broadcast %cst_28 : f32 to vector<2x32xf32>
    %65 = arith.addf %64, %63 : vector<2x32xf32>
    %66 = arith.divf %64, %65 : vector<2x32xf32>
    %67 = vector.extract_strided_slice %49 {offsets = [0, 64], sizes = [2, 32], strides = [1, 1]} : vector<2x96xf32> to vector<2x32xf32>
    %68 = vector.extract_strided_slice %50 {offsets = [0, 64], sizes = [2, 32], strides = [1, 1]} : vector<2x96xf32> to vector<2x32xf32>
    %69 = vector.broadcast %15 : vector<1x32xf32> to vector<2x32xf32>
    %70 = arith.addf %68, %69 : vector<2x32xf32>
    %71 = arith.mulf %58, %70 : vector<2x32xf32>
    %72 = arith.addf %67, %71 : vector<2x32xf32>
    %73 = math.tanh %72 : vector<2x32xf32>
    %cst_29 = arith.constant 1.000000e+00 : f32
    %74 = vector.broadcast %cst_29 : f32 to vector<2x32xf32>
    %75 = arith.subf %74, %66 : vector<2x32xf32>
    %76 = arith.mulf %75, %73 : vector<2x32xf32>
    %77 = arith.mulf %66, %46 : vector<2x32xf32>
    %78 = arith.addf %76, %77 : vector<2x32xf32>
    %79 = vector.shape_cast %78 : vector<2x32xf32> to vector<2x1x32xf32>
    %c0_30 = arith.constant 0 : index
    %c1 = arith.constant 1 : index
    %c0_31 = arith.constant 0 : index
    %80 = vector.load %arg7[%c0_30, %c1, %c0_31] : memref<2x8x32xf32, #tpu.memory_space<vmem>>, vector<2x1x32xf32>
    tpu.vector_store %arg7[%c0_30, %c1, %c0_31], %79 {strides = array<i32>} : memref<2x8x32xf32, #tpu.memory_space<vmem>>, vector<2x1x32xf32>,
    %c4 = arith.constant 4 : index
    %c0_32 = arith.constant 0 : index
    %81 = vector.load %arg9[%c4, %c0_32] : memref<16x96xf32, #tpu.memory_space<vmem>>, vector<2x96xf32>
    %cst_33 = arith.constant dense<0.000000e+00> : vector<2x96xf32>
    %82 = tpu.matmul %78, %14, %cst_33 {dimension_numbers = #tpu.dot_dimension_numbers<[1], [0], [0], [1], [0, 0, 1, 1], [], []>} : vector<2x32xf32>, vector<32x96xf32>, vector<2x96xf32> -> vector<2x96xf32>
    %83 = vector.extract_strided_slice %81 {offsets = [0, 0], sizes = [2, 32], strides = [1, 1]} : vector<2x96xf32> to vector<2x32xf32>
    %84 = vector.extract_strided_slice %82 {offsets = [0, 0], sizes = [2, 32], strides = [1, 1]} : vector<2x96xf32> to vector<2x32xf32>
    %85 = arith.addf %83, %84 : vector<2x32xf32>
    %86 = arith.negf %85 : vector<2x32xf32>
    %87 = math.exp %86 : vector<2x32xf32>
    %cst_34 = arith.constant 1.000000e+00 : f32
    %88 = vector.broadcast %cst_34 : f32 to vector<2x32xf32>
    %89 = arith.addf %88, %87 : vector<2x32xf32>
    %90 = arith.divf %88, %89 : vector<2x32xf32>
    %91 = vector.extract_strided_slice %81 {offsets = [0, 32], sizes = [2, 32], strides = [1, 1]} : vector<2x96xf32> to vector<2x32xf32>
    %92 = vector.extract_strided_slice %82 {offsets = [0, 32], sizes = [2, 32], strides = [1, 1]} : vector<2x96xf32> to vector<2x32xf32>
    %93 = arith.addf %91, %92 : vector<2x32xf32>
    %94 = arith.negf %93 : vector<2x32xf32>
    %95 = math.exp %94 : vector<2x32xf32>
    %cst_35 = arith.constant 1.000000e+00 : f32
    %96 = vector.broadcast %cst_35 : f32 to vector<2x32xf32>
    %97 = arith.addf %96, %95 : vector<2x32xf32>
    %98 = arith.divf %96, %97 : vector<2x32xf32>
    %99 = vector.extract_strided_slice %81 {offsets = [0, 64], sizes = [2, 32], strides = [1, 1]} : vector<2x96xf32> to vector<2x32xf32>
    %100 = vector.extract_strided_slice %82 {offsets = [0, 64], sizes = [2, 32], strides = [1, 1]} : vector<2x96xf32> to vector<2x32xf32>
    %101 = vector.broadcast %15 : vector<1x32xf32> to vector<2x32xf32>
    %102 = arith.addf %100, %101 : vector<2x32xf32>
    %103 = arith.mulf %90, %102 : vector<2x32xf32>
    %104 = arith.addf %99, %103 : vector<2x32xf32>
    %105 = math.tanh %104 : vector<2x32xf32>
    %cst_36 = arith.constant 1.000000e+00 : f32
    %106 = vector.broadcast %cst_36 : f32 to vector<2x32xf32>
    %107 = arith.subf %106, %98 : vector<2x32xf32>
    %108 = arith.mulf %107, %105 : vector<2x32xf32>
    %109 = arith.mulf %98, %78 : vector<2x32xf32>
    %110 = arith.addf %108, %109 : vector<2x32xf32>
    %111 = vector.shape_cast %110 : vector<2x32xf32> to vector<2x1x32xf32>
    %c0_37 = arith.constant 0 : index
    %c2_38 = arith.constant 2 : index
    %c0_39 = arith.constant 0 : index
    %112 = vector.load %arg7[%c0_37, %c2_38, %c0_39] : memref<2x8x32xf32, #tpu.memory_space<vmem>>, vector<2x1x32xf32>
    tpu.vector_store %arg7[%c0_37, %c2_38, %c0_39], %111 {strides = array<i32>} : memref<2x8x32xf32, #tpu.memory_space<vmem>>, vector<2x1x32xf32>,
    %c6 = arith.constant 6 : index
    %c0_40 = arith.constant 0 : index
    %113 = vector.load %arg9[%c6, %c0_40] : memref<16x96xf32, #tpu.memory_space<vmem>>, vector<2x96xf32>
    %cst_41 = arith.constant dense<0.000000e+00> : vector<2x96xf32>
    %114 = tpu.matmul %110, %14, %cst_41 {dimension_numbers = #tpu.dot_dimension_numbers<[1], [0], [0], [1], [0, 0, 1, 1], [], []>} : vector<2x32xf32>, vector<32x96xf32>, vector<2x96xf32> -> vector<2x96xf32>
    %115 = vector.extract_strided_slice %113 {offsets = [0, 0], sizes = [2, 32], strides = [1, 1]} : vector<2x96xf32> to vector<2x32xf32>
    %116 = vector.extract_strided_slice %114 {offsets = [0, 0], sizes = [2, 32], strides = [1, 1]} : vector<2x96xf32> to vector<2x32xf32>
    %117 = arith.addf %115, %116 : vector<2x32xf32>
    %118 = arith.negf %117 : vector<2x32xf32>
    %119 = math.exp %118 : vector<2x32xf32>
    %cst_42 = arith.constant 1.000000e+00 : f32
    %120 = vector.broadcast %cst_42 : f32 to vector<2x32xf32>
    %121 = arith.addf %120, %119 : vector<2x32xf32>
    %122 = arith.divf %120, %121 : vector<2x32xf32>
    %123 = vector.extract_strided_slice %113 {offsets = [0, 32], sizes = [2, 32], strides = [1, 1]} : vector<2x96xf32> to vector<2x32xf32>
    %124 = vector.extract_strided_slice %114 {offsets = [0, 32], sizes = [2, 32], strides = [1, 1]} : vector<2x96xf32> to vector<2x32xf32>
    %125 = arith.addf %123, %124 : vector<2x32xf32>
    %126 = arith.negf %125 : vector<2x32xf32>
    %127 = math.exp %126 : vector<2x32xf32>
    %cst_43 = arith.constant 1.000000e+00 : f32
    %128 = vector.broadcast %cst_43 : f32 to vector<2x32xf32>
    %129 = arith.addf %128, %127 : vector<2x32xf32>
    %130 = arith.divf %128, %129 : vector<2x32xf32>
    %131 = vector.extract_strided_slice %113 {offsets = [0, 64], sizes = [2, 32], strides = [1, 1]} : vector<2x96xf32> to vector<2x32xf32>
    %132 = vector.extract_strided_slice %114 {offsets = [0, 64], sizes = [2, 32], strides = [1, 1]} : vector<2x96xf32> to vector<2x32xf32>
    %133 = vector.broadcast %15 : vector<1x32xf32> to vector<2x32xf32>
    %134 = arith.addf %132, %133 : vector<2x32xf32>
    %135 = arith.mulf %122, %134 : vector<2x32xf32>
    %136 = arith.addf %131, %135 : vector<2x32xf32>
    %137 = math.tanh %136 : vector<2x32xf32>
    %cst_44 = arith.constant 1.000000e+00 : f32
    %138 = vector.broadcast %cst_44 : f32 to vector<2x32xf32>
    %139 = arith.subf %138, %130 : vector<2x32xf32>
    %140 = arith.mulf %139, %137 : vector<2x32xf32>
    %141 = arith.mulf %130, %110 : vector<2x32xf32>
    %142 = arith.addf %140, %141 : vector<2x32xf32>
    %143 = vector.shape_cast %142 : vector<2x32xf32> to vector<2x1x32xf32>
    %c0_45 = arith.constant 0 : index
    %c3 = arith.constant 3 : index
    %c0_46 = arith.constant 0 : index
    %144 = vector.load %arg7[%c0_45, %c3, %c0_46] : memref<2x8x32xf32, #tpu.memory_space<vmem>>, vector<2x1x32xf32>
    tpu.vector_store %arg7[%c0_45, %c3, %c0_46], %143 {strides = array<i32>} : memref<2x8x32xf32, #tpu.memory_space<vmem>>, vector<2x1x32xf32>,
    %c8 = arith.constant 8 : index
    %c0_47 = arith.constant 0 : index
    %145 = vector.load %arg9[%c8, %c0_47] : memref<16x96xf32, #tpu.memory_space<vmem>>, vector<2x96xf32>
    %cst_48 = arith.constant dense<0.000000e+00> : vector<2x96xf32>
    %146 = tpu.matmul %142, %14, %cst_48 {dimension_numbers = #tpu.dot_dimension_numbers<[1], [0], [0], [1], [0, 0, 1, 1], [], []>} : vector<2x32xf32>, vector<32x96xf32>, vector<2x96xf32> -> vector<2x96xf32>
    %147 = vector.extract_strided_slice %145 {offsets = [0, 0], sizes = [2, 32], strides = [1, 1]} : vector<2x96xf32> to vector<2x32xf32>
    %148 = vector.extract_strided_slice %146 {offsets = [0, 0], sizes = [2, 32], strides = [1, 1]} : vector<2x96xf32> to vector<2x32xf32>
    %149 = arith.addf %147, %148 : vector<2x32xf32>
    %150 = arith.negf %149 : vector<2x32xf32>
    %151 = math.exp %150 : vector<2x32xf32>
    %cst_49 = arith.constant 1.000000e+00 : f32
    %152 = vector.broadcast %cst_49 : f32 to vector<2x32xf32>
    %153 = arith.addf %152, %151 : vector<2x32xf32>
    %154 = arith.divf %152, %153 : vector<2x32xf32>
    %155 = vector.extract_strided_slice %145 {offsets = [0, 32], sizes = [2, 32], strides = [1, 1]} : vector<2x96xf32> to vector<2x32xf32>
    %156 = vector.extract_strided_slice %146 {offsets = [0, 32], sizes = [2, 32], strides = [1, 1]} : vector<2x96xf32> to vector<2x32xf32>
    %157 = arith.addf %155, %156 : vector<2x32xf32>
    %158 = arith.negf %157 : vector<2x32xf32>
    %159 = math.exp %158 : vector<2x32xf32>
    %cst_50 = arith.constant 1.000000e+00 : f32
    %160 = vector.broadcast %cst_50 : f32 to vector<2x32xf32>
    %161 = arith.addf %160, %159 : vector<2x32xf32>
    %162 = arith.divf %160, %161 : vector<2x32xf32>
    %163 = vector.extract_strided_slice %145 {offsets = [0, 64], sizes = [2, 32], strides = [1, 1]} : vector<2x96xf32> to vector<2x32xf32>
    %164 = vector.extract_strided_slice %146 {offsets = [0, 64], sizes = [2, 32], strides = [1, 1]} : vector<2x96xf32> to vector<2x32xf32>
    %165 = vector.broadcast %15 : vector<1x32xf32> to vector<2x32xf32>
    %166 = arith.addf %164, %165 : vector<2x32xf32>
    %167 = arith.mulf %154, %166 : vector<2x32xf32>
    %168 = arith.addf %163, %167 : vector<2x32xf32>
    %169 = math.tanh %168 : vector<2x32xf32>
    %cst_51 = arith.constant 1.000000e+00 : f32
    %170 = vector.broadcast %cst_51 : f32 to vector<2x32xf32>
    %171 = arith.subf %170, %162 : vector<2x32xf32>
    %172 = arith.mulf %171, %169 : vector<2x32xf32>
    %173 = arith.mulf %162, %142 : vector<2x32xf32>
    %174 = arith.addf %172, %173 : vector<2x32xf32>
    %175 = vector.shape_cast %174 : vector<2x32xf32> to vector<2x1x32xf32>
    %c0_52 = arith.constant 0 : index
    %c4_53 = arith.constant 4 : index
    %c0_54 = arith.constant 0 : index
    %176 = vector.load %arg7[%c0_52, %c4_53, %c0_54] : memref<2x8x32xf32, #tpu.memory_space<vmem>>, vector<2x1x32xf32>
    tpu.vector_store %arg7[%c0_52, %c4_53, %c0_54], %175 {strides = array<i32>} : memref<2x8x32xf32, #tpu.memory_space<vmem>>, vector<2x1x32xf32>,
    %c10 = arith.constant 10 : index
    %c0_55 = arith.constant 0 : index
    %177 = vector.load %arg9[%c10, %c0_55] : memref<16x96xf32, #tpu.memory_space<vmem>>, vector<2x96xf32>
    %cst_56 = arith.constant dense<0.000000e+00> : vector<2x96xf32>
    %178 = tpu.matmul %174, %14, %cst_56 {dimension_numbers = #tpu.dot_dimension_numbers<[1], [0], [0], [1], [0, 0, 1, 1], [], []>} : vector<2x32xf32>, vector<32x96xf32>, vector<2x96xf32> -> vector<2x96xf32>
    %179 = vector.extract_strided_slice %177 {offsets = [0, 0], sizes = [2, 32], strides = [1, 1]} : vector<2x96xf32> to vector<2x32xf32>
    %180 = vector.extract_strided_slice %178 {offsets = [0, 0], sizes = [2, 32], strides = [1, 1]} : vector<2x96xf32> to vector<2x32xf32>
    %181 = arith.addf %179, %180 : vector<2x32xf32>
    %182 = arith.negf %181 : vector<2x32xf32>
    %183 = math.exp %182 : vector<2x32xf32>
    %cst_57 = arith.constant 1.000000e+00 : f32
    %184 = vector.broadcast %cst_57 : f32 to vector<2x32xf32>
    %185 = arith.addf %184, %183 : vector<2x32xf32>
    %186 = arith.divf %184, %185 : vector<2x32xf32>
    %187 = vector.extract_strided_slice %177 {offsets = [0, 32], sizes = [2, 32], strides = [1, 1]} : vector<2x96xf32> to vector<2x32xf32>
    %188 = vector.extract_strided_slice %178 {offsets = [0, 32], sizes = [2, 32], strides = [1, 1]} : vector<2x96xf32> to vector<2x32xf32>
    %189 = arith.addf %187, %188 : vector<2x32xf32>
    %190 = arith.negf %189 : vector<2x32xf32>
    %191 = math.exp %190 : vector<2x32xf32>
    %cst_58 = arith.constant 1.000000e+00 : f32
    %192 = vector.broadcast %cst_58 : f32 to vector<2x32xf32>
    %193 = arith.addf %192, %191 : vector<2x32xf32>
    %194 = arith.divf %192, %193 : vector<2x32xf32>
    %195 = vector.extract_strided_slice %177 {offsets = [0, 64], sizes = [2, 32], strides = [1, 1]} : vector<2x96xf32> to vector<2x32xf32>
    %196 = vector.extract_strided_slice %178 {offsets = [0, 64], sizes = [2, 32], strides = [1, 1]} : vector<2x96xf32> to vector<2x32xf32>
    %197 = vector.broadcast %15 : vector<1x32xf32> to vector<2x32xf32>
    %198 = arith.addf %196, %197 : vector<2x32xf32>
    %199 = arith.mulf %186, %198 : vector<2x32xf32>
    %200 = arith.addf %195, %199 : vector<2x32xf32>
    %201 = math.tanh %200 : vector<2x32xf32>
    %cst_59 = arith.constant 1.000000e+00 : f32
    %202 = vector.broadcast %cst_59 : f32 to vector<2x32xf32>
    %203 = arith.subf %202, %194 : vector<2x32xf32>
    %204 = arith.mulf %203, %201 : vector<2x32xf32>
    %205 = arith.mulf %194, %174 : vector<2x32xf32>
    %206 = arith.addf %204, %205 : vector<2x32xf32>
    %207 = vector.shape_cast %206 : vector<2x32xf32> to vector<2x1x32xf32>
    %c0_60 = arith.constant 0 : index
    %c5 = arith.constant 5 : index
    %c0_61 = arith.constant 0 : index
    %208 = vector.load %arg7[%c0_60, %c5, %c0_61] : memref<2x8x32xf32, #tpu.memory_space<vmem>>, vector<2x1x32xf32>
    tpu.vector_store %arg7[%c0_60, %c5, %c0_61], %207 {strides = array<i32>} : memref<2x8x32xf32, #tpu.memory_space<vmem>>, vector<2x1x32xf32>,
    %c12 = arith.constant 12 : index
    %c0_62 = arith.constant 0 : index
    %209 = vector.load %arg9[%c12, %c0_62] : memref<16x96xf32, #tpu.memory_space<vmem>>, vector<2x96xf32>
    %cst_63 = arith.constant dense<0.000000e+00> : vector<2x96xf32>
    %210 = tpu.matmul %206, %14, %cst_63 {dimension_numbers = #tpu.dot_dimension_numbers<[1], [0], [0], [1], [0, 0, 1, 1], [], []>} : vector<2x32xf32>, vector<32x96xf32>, vector<2x96xf32> -> vector<2x96xf32>
    %211 = vector.extract_strided_slice %209 {offsets = [0, 0], sizes = [2, 32], strides = [1, 1]} : vector<2x96xf32> to vector<2x32xf32>
    %212 = vector.extract_strided_slice %210 {offsets = [0, 0], sizes = [2, 32], strides = [1, 1]} : vector<2x96xf32> to vector<2x32xf32>
    %213 = arith.addf %211, %212 : vector<2x32xf32>
    %214 = arith.negf %213 : vector<2x32xf32>
    %215 = math.exp %214 : vector<2x32xf32>
    %cst_64 = arith.constant 1.000000e+00 : f32
    %216 = vector.broadcast %cst_64 : f32 to vector<2x32xf32>
    %217 = arith.addf %216, %215 : vector<2x32xf32>
    %218 = arith.divf %216, %217 : vector<2x32xf32>
    %219 = vector.extract_strided_slice %209 {offsets = [0, 32], sizes = [2, 32], strides = [1, 1]} : vector<2x96xf32> to vector<2x32xf32>
    %220 = vector.extract_strided_slice %210 {offsets = [0, 32], sizes = [2, 32], strides = [1, 1]} : vector<2x96xf32> to vector<2x32xf32>
    %221 = arith.addf %219, %220 : vector<2x32xf32>
    %222 = arith.negf %221 : vector<2x32xf32>
    %223 = math.exp %222 : vector<2x32xf32>
    %cst_65 = arith.constant 1.000000e+00 : f32
    %224 = vector.broadcast %cst_65 : f32 to vector<2x32xf32>
    %225 = arith.addf %224, %223 : vector<2x32xf32>
    %226 = arith.divf %224, %225 : vector<2x32xf32>
    %227 = vector.extract_strided_slice %209 {offsets = [0, 64], sizes = [2, 32], strides = [1, 1]} : vector<2x96xf32> to vector<2x32xf32>
    %228 = vector.extract_strided_slice %210 {offsets = [0, 64], sizes = [2, 32], strides = [1, 1]} : vector<2x96xf32> to vector<2x32xf32>
    %229 = vector.broadcast %15 : vector<1x32xf32> to vector<2x32xf32>
    %230 = arith.addf %228, %229 : vector<2x32xf32>
    %231 = arith.mulf %218, %230 : vector<2x32xf32>
    %232 = arith.addf %227, %231 : vector<2x32xf32>
    %233 = math.tanh %232 : vector<2x32xf32>
    %cst_66 = arith.constant 1.000000e+00 : f32
    %234 = vector.broadcast %cst_66 : f32 to vector<2x32xf32>
    %235 = arith.subf %234, %226 : vector<2x32xf32>
    %236 = arith.mulf %235, %233 : vector<2x32xf32>
    %237 = arith.mulf %226, %206 : vector<2x32xf32>
    %238 = arith.addf %236, %237 : vector<2x32xf32>
    %239 = vector.shape_cast %238 : vector<2x32xf32> to vector<2x1x32xf32>
    %c0_67 = arith.constant 0 : index
    %c6_68 = arith.constant 6 : index
    %c0_69 = arith.constant 0 : index
    %240 = vector.load %arg7[%c0_67, %c6_68, %c0_69] : memref<2x8x32xf32, #tpu.memory_space<vmem>>, vector<2x1x32xf32>
    tpu.vector_store %arg7[%c0_67, %c6_68, %c0_69], %239 {strides = array<i32>} : memref<2x8x32xf32, #tpu.memory_space<vmem>>, vector<2x1x32xf32>,
    %c14 = arith.constant 14 : index
    %c0_70 = arith.constant 0 : index
    %241 = vector.load %arg9[%c14, %c0_70] : memref<16x96xf32, #tpu.memory_space<vmem>>, vector<2x96xf32>
    %cst_71 = arith.constant dense<0.000000e+00> : vector<2x96xf32>
    %242 = tpu.matmul %238, %14, %cst_71 {dimension_numbers = #tpu.dot_dimension_numbers<[1], [0], [0], [1], [0, 0, 1, 1], [], []>} : vector<2x32xf32>, vector<32x96xf32>, vector<2x96xf32> -> vector<2x96xf32>
    %243 = vector.extract_strided_slice %241 {offsets = [0, 0], sizes = [2, 32], strides = [1, 1]} : vector<2x96xf32> to vector<2x32xf32>
    %244 = vector.extract_strided_slice %242 {offsets = [0, 0], sizes = [2, 32], strides = [1, 1]} : vector<2x96xf32> to vector<2x32xf32>
    %245 = arith.addf %243, %244 : vector<2x32xf32>
    %246 = arith.negf %245 : vector<2x32xf32>
    %247 = math.exp %246 : vector<2x32xf32>
    %cst_72 = arith.constant 1.000000e+00 : f32
    %248 = vector.broadcast %cst_72 : f32 to vector<2x32xf32>
    %249 = arith.addf %248, %247 : vector<2x32xf32>
    %250 = arith.divf %248, %249 : vector<2x32xf32>
    %251 = vector.extract_strided_slice %241 {offsets = [0, 32], sizes = [2, 32], strides = [1, 1]} : vector<2x96xf32> to vector<2x32xf32>
    %252 = vector.extract_strided_slice %242 {offsets = [0, 32], sizes = [2, 32], strides = [1, 1]} : vector<2x96xf32> to vector<2x32xf32>
    %253 = arith.addf %251, %252 : vector<2x32xf32>
    %254 = arith.negf %253 : vector<2x32xf32>
    %255 = math.exp %254 : vector<2x32xf32>
    %cst_73 = arith.constant 1.000000e+00 : f32
    %256 = vector.broadcast %cst_73 : f32 to vector<2x32xf32>
    %257 = arith.addf %256, %255 : vector<2x32xf32>
    %258 = arith.divf %256, %257 : vector<2x32xf32>
    %259 = vector.extract_strided_slice %241 {offsets = [0, 64], sizes = [2, 32], strides = [1, 1]} : vector<2x96xf32> to vector<2x32xf32>
    %260 = vector.extract_strided_slice %242 {offsets = [0, 64], sizes = [2, 32], strides = [1, 1]} : vector<2x96xf32> to vector<2x32xf32>
    %261 = vector.broadcast %15 : vector<1x32xf32> to vector<2x32xf32>
    %262 = arith.addf %260, %261 : vector<2x32xf32>
    %263 = arith.mulf %250, %262 : vector<2x32xf32>
    %264 = arith.addf %259, %263 : vector<2x32xf32>
    %265 = math.tanh %264 : vector<2x32xf32>
    %cst_74 = arith.constant 1.000000e+00 : f32
    %266 = vector.broadcast %cst_74 : f32 to vector<2x32xf32>
    %267 = arith.subf %266, %258 : vector<2x32xf32>
    %268 = arith.mulf %267, %265 : vector<2x32xf32>
    %269 = arith.mulf %258, %238 : vector<2x32xf32>
    %270 = arith.addf %268, %269 : vector<2x32xf32>
    %271 = vector.shape_cast %270 : vector<2x32xf32> to vector<2x1x32xf32>
    %c0_75 = arith.constant 0 : index
    %c7 = arith.constant 7 : index
    %c0_76 = arith.constant 0 : index
    %272 = vector.load %arg7[%c0_75, %c7, %c0_76] : memref<2x8x32xf32, #tpu.memory_space<vmem>>, vector<2x1x32xf32>
    tpu.vector_store %arg7[%c0_75, %c7, %c0_76], %271 {strides = array<i32>} : memref<2x8x32xf32, #tpu.memory_space<vmem>>, vector<2x1x32xf32>,
    %c0_77 = arith.constant 0 : index
    %c0_78 = arith.constant 0 : index
    %273 = vector.load %arg8[%c0_77, %c0_78] : memref<2x32xf32, #tpu.memory_space<vmem>>, vector<2x32xf32>
    tpu.vector_store %arg8[%c0_77, %c0_78], %270 {strides = array<i32>} : memref<2x32xf32, #tpu.memory_space<vmem>>, vector<2x32xf32>,
    return
  }
}

</mosaic_0001>

<bundles_post_ra>
// kernel: encoder_rnn_forward.1
= control target key start
LH: loop header
LB: loop body
LE: loop exit
PB: predicated region body
PF: predicated region fallthrough
CT: control target
= control target key end

     0   :  { %14 = vsyncpa [#allocation4], 0  ;;  %vm60_vm0 = vcmask 1041408   ;;  %v1715_v2 = vmov 0   ;;  %s2098_s0 = inlined_call_operand.vmem [shape: s32[16,1], index: 0, kind: input, shape index: {}]   ;;  %s2099_s1 = inlined_call_operand.vmem [shape: f32[50,32], index: 1, kind: input, shape index: {}]   ;;  %s2100_s2 = inlined_call_operand.vmem [shape: f32[32,96], index: 2, kind: input, shape index: {}]   ;;  %s2101_s3 = inlined_call_operand.vmem [shape: f32[32,96], index: 3, kind: input, shape index: {}]   ;;  %s2102_s4 = inlined_call_operand.vmem [shape: f32[1,96], index: 4, kind: input, shape index: {}]   ;;  %s2103_s5 = inlined_call_operand.vmem [shape: f32[1,32], index: 5, kind: input, shape index: {}]   ;;  %s2104_s6 = inlined_call_operand.vmem [shape: f32[2,32], index: 6, kind: input, shape index: {}]   ;;  %s2105_s7 = inlined_call_operand.hbm [shape: f32[2,8,32], index: 7, kind: output, shape index: {0}]   ;;  %s2106_s8 = inlined_call_operand.hbm [shape: f32[2,32], index: 8, kind: output, shape index: {1}]  }
   0x1   :  { %v30_v0 = vld [vmem:[%s2098_s0] sm:$0xff]  ;;  %v52_v1 = vld [vmem:[%s2099_s1 + $0x30] sm:$0x3]  ;;  %1622 = vset.pattern.permute.xlu0 %v1715_v2  ;;  %v51_v3 = vld [vmem:[%s2099_s1 + $0x28] sm:$0xff] }
   0x2   :  { %1495 = vmatprep.subr.msk.mxu0 %vm60_vm0, %v52_v1  ;;  %35 = vperm.xlu0 %1622, %v30_v0   ;;  %v50_v4 = vld [vmem:[%s2099_s1 + $0x20] sm:$0xff]  ;;  %v31_v5 = vld [vmem:[%s2098_s0 + $0x8] sm:$0xff] }
   0x3   :  { %1496 = vmatpush3.msk.msra.mxu0 %vm60_vm0, %v52_v1 }
   0x4   :  { %1497 = vmatprep.subr.mxu0 %v51_v3 }
   0x5   :  { %15 = vsyncpa [#allocation6], 0  ;;  %1498 = vmatpush3.msra.mxu0 %v51_v3  ;;  %v49_v6 = vld [vmem:[%s2099_s1 + $0x18] sm:$0xff]  ;;  %v141_v8 = vld [vmem:[%s2100_s2 + $0x10] sm:$0xff]  ;;  %v1716_v13 = vmov 0.0   ;;  %v32_v14 = vlaneseq  ;;  %vm53_vm1 = vcmask 408576  }
   0x6   :  { %v142_v7 = vld [vmem:[%s2100_s2 + $0x18] sm:$0xff]  ;;  %1499 = vmatprep.subr.mxu0 %v50_v4  ;;  %38 = vperm.xlu0 %1622, %v31_v5   ;;  %v48_v9 = vld [vmem:[%s2099_s1 + $0x10] sm:$0xff]  ;;  %v140_v10 = vld [vmem:[%s2100_s2 + $0x8] sm:$0xff]  ;;  %vm1717_vm4 = vmmov 0   ;;  %s1718_s16 = smov 64   ;;  %vm150_vm5 = vcmask 261120  }
   0x7   :  { %1512 = vmatprep.subr.mxu1 %v142_v7  ;;  %1500 = vmatpush3.msra.mxu0 %v50_v4  ;;  %v47_v11 = vld [vmem:[%s2099_s1 + $0x8] sm:$0xff]  ;;  %v46_v12 = vld [vmem:[%s2099_s1] sm:$0xff]  ;;  %v33_v15 = vand.u32 127, %v32_v14  ;;  %v1818_v21 = vld [vmem:[%s2101_s3 + $0x18] sm:$0xff]  ;;  %vm232_vm6 = vcmask 785408   ;;  %s1720_s18 = smov 96  }
   0x8   :  { %1501 = vmatprep.subr.mxu0 %v49_v6  ;;  %1513 = vmatpush3.msra.mxu1 %v142_v7  ;;  %v139_v20 = vld [vmem:[%s2100_s2] sm:$0xff]  ;;  %v1825_v22 = vld [vmem:[%s2101_s3 + $0x10] sm:$0xff]  ;;  %v1831_v23 = vld [vmem:[%s2101_s3 + $0x8] sm:$0xff]  ;;  %vm390_vm7 = vcmask 253952   ;;  %s1722_s19 = smov [#allocation3]   ;;  %s1723_s0 = smov [#allocation5]  }
   0x9   :  { %1502 = vmatpush3.msra.mxu0 %v49_v6  ;;  %1514 = vmatprep.subr.mxu1 %v141_v8  ;;  %v1838_v24 = vld [vmem:[%s2101_s3] sm:$0xff]  ;;  %s1390_s20 = sshll.u32 %s1722_s19, 4  ;;  %s1403_s21 = sshll.u32 %s1723_s0, 4  ;;  %vm1383_vm8 = vcmask 254976   ;;  %s1391_s20 = int_to_ptr.vmem [resolvable:$true] %s1390_s20  ;;  %s1404_s21 = int_to_ptr.vmem [resolvable:$true] %s1403_s21 }
   0xa   :  { %1503 = vmatprep.subr.mxu0 %v48_v9  ;;  %1515 = vmatpush3.msra.mxu1 %v141_v8  ;;  %v1425_v25 = vld [vmem:[%s2103_s5] ss:$0 sm:$0xff]  ;;  %s1671_s22 = scalar_lea.vmem %s1391_s20, 256  ;;  %p1676_p1 = scmp.lt.s32.totalorder %s1391_s20, %s1391_s20 }
   0xb   :  { %1504 = vmatpush3.msra.mxu0 %v48_v9  ;;  %1516 = vmatprep.subr.mxu1 %v140_v10  ;;  %v240_v28 = vld [vmem:[%s2104_s6] sm:$0x3]  ;;  %p1672_p0 = scmp.ne.s32.totalorder %s1391_s20, %s1671_s22  ;;  %p1677_p2 = scmp.lt.s32.totalorder %s1671_s22, %s1671_s22 }
   0xc   :  { %1505 = vmatprep.subr.mxu0 %v47_v11  ;;  %1517 = vmatpush3.msra.mxu1 %v140_v10  ;;  %v1420_v29 = vld [vmem:[%s2102_s4] ss:$0 sm:$0xff]  ;;  %s1719_s4 = smov 32  }
   0xd   :  { %1506 = vmatpush3.msra.mxu0 %v47_v11  ;;  %1518 = vmatprep.subr.mxu1 %v139_v20  ;;  %p1678_p3 = por %p1677_p2, %p1676_p1 }
   0xe   :  { %1507 = vmatprep.subr.mxu0 %v46_v12  ;;  %1519 = vmatpush3.msra.mxu1 %v139_v20 }
   0xf   :  { %1508 = vmatpush3.msra.mxu0 %v46_v12  ;;  %1523 = vmatprep.subr.mxu1 %v1716_v13  ;;  %p1679_p4 = pnand %p1678_p3, %p1672_p0 }
  0x10   :  { %1534 = vmatprep.subr.mxu0 %v1716_v13  ;;  %327 = vrot.lane.b32.xlu1 %v1425_v25, %s1718_s16 }
  0x7d   :  { %v36_v16 = vpop.permute.xlu0 %35 }
  0x7e   :  { %vm40_vm2 = vcmp.eq.s32.totalorder %v36_v16, %v33_v15 }
  0x7f   :  { %v1415_v17 = vsel %vm40_vm2, 1.0, %v1716_v13 }
  0x80   :  { %1509 = vmatprep.mubr.msk.f32.mxu0 %vm53_vm1, %v1415_v17 }
  0x81   :  { %v39_v18 = vpop.permute.xlu0 %38 }
  0x82   :  { %vm41_vm3 = vcmp.eq.s32.totalorder %v39_v18, %v33_v15  ;;  %v1878_v34 = vpop.permute.xlu1 %327 }
  0x83   :  { %v1416_v19 = vsel %vm41_vm3, 1.0, %v1716_v13 }
  0x84   :  { %1510 = vmatmul.mubr.msk.f32.vlgmr.msra.gmra.mxu0 %vm53_vm1, %v1416_v19 }
  0x85   :  { %1535 = vmatpush3.msra.mxu0 %v1818_v21  ;;  %1542 = vmatprep.mubr.msk.f32.mxu0 %vm1717_vm4, %v1716_v13 }
  0x86   :  { %1536 = vmatprep.subr.mxu0 %v1716_v13 }
  0x87   :  { %1537 = vmatpush3.msra.mxu0 %v1825_v22 }
  0x88   :  { %1538 = vmatprep.subr.mxu0 %v1716_v13 }
  0x89   :  { %1539 = vmatpush3.msra.mxu0 %v1831_v23 }
  0x8a   :  { %1540 = vmatprep.subr.mxu0 %v1716_v13 }
  0x8b   :  { %1541 = vmatpush3.msra.mxu0 %v1838_v24 }
  0x8c   :  { %1556 = vmatprep.subr.mxu0 %v1716_v13 }
 0x144   :  { %v1511_v26 = vpop.f32.mrf.mxu0 }
 0x146   :  { %v130_v27 = vpop.f32.mrf.mxu0 }
 0x147   :  { %1520 = vmatprep.mubr.msk.f32.mxu1 %vm150_vm5, %v130_v27 }
 0x148   :  { %1521 = vmatmul.mubr.msk.f32.vlgmr.msra.gmra.mxu1 %vm150_vm5, %v1511_v26 }
 0x149   :  { %1524 = vmatpush3.msra.mxu1 %v1818_v21  ;;  %1531 = vmatprep.mubr.msk.f32.mxu1 %vm1717_vm4, %v1716_v13 }
 0x14a   :  { %1525 = vmatprep.subr.mxu1 %v1716_v13 }
 0x14b   :  { %1526 = vmatpush3.msra.mxu1 %v1825_v22 }
 0x14c   :  { %1527 = vmatprep.subr.mxu1 %v1716_v13 }
 0x14d   :  { %1528 = vmatpush3.msra.mxu1 %v1831_v23 }
 0x14e   :  { %1529 = vmatprep.subr.mxu1 %v1716_v13 }
 0x14f   :  { %1530 = vmatpush3.msra.mxu1 %v1838_v24 }
 0x150   :  { %1532 = vmatmul.mubr.msk.f32.vlgmr.msra.gmra.mxu1 %vm150_vm5, %v240_v28  ;;  %1545 = vmatprep.subr.mxu1 %v1716_v13 }
 0x151   :  { %1546 = vmatpush3.msra.mxu1 %v1818_v21  ;;  %1553 = vmatprep.mubr.msk.f32.mxu1 %vm1717_vm4, %v1716_v13 }
 0x152   :  { %1547 = vmatprep.subr.mxu1 %v1716_v13 }
 0x153   :  { %1548 = vmatpush3.msra.mxu1 %v1825_v22 }
 0x154   :  { %1549 = vmatprep.subr.mxu1 %v1716_v13 }
 0x155   :  { %1550 = vmatpush3.msra.mxu1 %v1831_v23 }
 0x156   :  { %1551 = vmatprep.subr.mxu1 %v1716_v13 }
 0x157   :  { %1552 = vmatpush3.msra.mxu1 %v1838_v24 }
 0x158   :  { %1567 = vmatprep.subr.mxu1 %v1716_v13 }
 0x208   :  { %v1522_v30 = vpop.f32.mrf.mxu1 }
 0x209   :  { %v229_v31 = vadd.f32 %v1522_v30, %v1420_v29 }
 0x20a   :  { %v223_v32 = vpop.f32.mrf.mxu1 }
 0x20b   :  { %234 = vst.msk [vmem:[#allocation2 + $0x8] sm:$0xff] %vm232_vm6, %v229_v31  ;;  %v224_v33 = vadd.f32 %v1420_v29, %v223_v32 }
 0x20d   :  { %233 = vst.msk [vmem:[#allocation2] sm:$0xff] %vm232_vm6, %v224_v33 }
 0x210   :  { %v311_v35 = vpop.f32.mrf.mxu1 }
 0x211   :  { %v330_v36 = vadd.f32 %v1878_v34, %v311_v35 }
 0x212   :  { %v1533_v37 = vpop.f32.mrf.mxu1 }
 0x213   :  { %332 = vrot.lane.b32.xlu1 %v330_v36, %s1718_s16 }
 0x214   :  { %v241_v38 = vld [vmem:[#allocation2] sm:$0x3]  ;;  %v393_v59 = vld [vmem:[#allocation2 + $0x2] sm:$0x3]  ;;  %v534_v17 = vld [vmem:[#allocation2 + $0x4] sm:$0x3] }
 0x215   :  { %v315_v39 = vadd.f32 %v311_v35, %v241_v38 }
 0x217   :  { %v1424_v40 = vmul.f32 -1.442695, %v315_v39 }
 0x219   :  { %1623 = vpow2.f32 %v1424_v40 }
 0x226   :  { %v1624_v41 = vpop.eup %1623 }
 0x227   :  { %v319_v42 = vadd.f32 1.0, %v1624_v41 }
 0x229   :  { %1625 = vrcp.f32 %v319_v42  ;;  %v675_v42 = vld [vmem:[#allocation2 + $0x6] sm:$0x3] }
 0x236   :  { %v1626_v43 = vpop.eup %1625 }
 0x237   :  { %v342_v50 = vsub.f32 1.0, %v1626_v43 }
 0x285   :  { %v333_v44 = vpop.permute.xlu1 %332 }
 0x286   :  { %v335_v45 = vmul.f32 %v1626_v43, %v333_v44 }
 0x288   :  { %337 = vrot.lane.b32.xlu0 %v335_v45, %s1718_s16 }
 0x28c   :  { %348 = vrot.lane.b32.xlu0 %v240_v28, %s1719_s4 }
 0x2fa   :  { %v338_v46 = vpop.permute.xlu0 %337 }
 0x2fb   :  { %v340_v47 = vadd.f32 %v338_v46, %v241_v38 }
 0x2fd   :  { %1627 = vtanh.f32 %v340_v47 }
 0x2fe   :  { %v349_v49 = vpop.permute.xlu0 %348 }
 0x2ff   :  { %v351_v52 = vmul.f32 %v1626_v43, %v349_v49 }
 0x30a   :  { %v1628_v48 = vpop.eup %1627 }
 0x30b   :  { %344 = vrot.lane.b32.xlu1 %v1628_v48, %s1720_s18 }
 0x37d   :  { %v345_v51 = vpop.permute.xlu1 %344 }
 0x37e   :  { %v347_v53 = vmul.f32 %v345_v51, %v342_v50 }
 0x380   :  { %v1884_v54 = vadd.f32 %v351_v52, %v347_v53 }
 0x382   :  { %394 = vrot.lane.b32.xlu1 %v1884_v54, %s1720_s18 }
 0x3f4   :  { %v395_v55 = vpop.permute.xlu1 %394 }
 0x3f5   :  { %1543 = vmatmul.mubr.msk.f32.vlgmr.msra.gmra.mxu0 %vm150_vm5, %v395_v55 }
 0x3f6   :  { %1557 = vmatpush3.msra.mxu0 %v1818_v21  ;;  %1564 = vmatprep.mubr.msk.f32.mxu0 %vm1717_vm4, %v1716_v13 }
 0x3f7   :  { %1558 = vmatprep.subr.mxu0 %v1716_v13 }
 0x3f8   :  { %1559 = vmatpush3.msra.mxu0 %v1825_v22 }
 0x3f9   :  { %1560 = vmatprep.subr.mxu0 %v1716_v13 }
 0x3fa   :  { %1561 = vmatpush3.msra.mxu0 %v1831_v23 }
 0x3fb   :  { %1562 = vmatprep.subr.mxu0 %v1716_v13 }
 0x3fc   :  { %1563 = vmatpush3.msra.mxu0 %v1838_v24 }
 0x3fd   :  { %1578 = vmatprep.subr.mxu0 %v1716_v13 }
 0x4b5   :  { %v464_v56 = vpop.f32.mrf.mxu0 }
 0x4b6   :  { %v475_v57 = vadd.f32 %v464_v56, %v1878_v34  ;;  %v468_v60 = vadd.f32 %v464_v56, %v393_v59 }
 0x4b7   :  { %v1544_v58 = vpop.f32.mrf.mxu0 }
 0x4b8   :  { %477 = vrot.lane.b32.xlu0 %v475_v57, %s1718_s16  ;;  %v1427_v61 = vmul.f32 -1.442695, %v468_v60 }
 0x4ba   :  { %1629 = vpow2.f32 %v1427_v61 }
 0x4c7   :  { %v1630_v62 = vpop.eup %1629 }
 0x4c8   :  { %v472_v63 = vadd.f32 1.0, %v1630_v62 }
 0x4ca   :  { %1631 = vrcp.f32 %v472_v63  ;;  %v816_v63 = vld [vmem:[#allocation2 + $0x8] sm:$0x3] }
 0x4d7   :  { %v1632_v0 = vpop.eup %1631 }
 0x4d8   :  { %v487_v6 = vsub.f32 1.0, %v1632_v0  ;;  %v493_v8 = vmul.f32 %v1632_v0, %v1884_v54 }
 0x52a   :  { %v478_v1 = vpop.permute.xlu0 %477 }
 0x52b   :  { %v480_v2 = vmul.f32 %v1632_v0, %v478_v1 }
 0x52d   :  { %482 = vrot.lane.b32.xlu1 %v480_v2, %s1718_s16 }
 0x59f   :  { %v483_v3 = vpop.permute.xlu1 %482 }
 0x5a0   :  { %v485_v4 = vadd.f32 %v483_v3, %v393_v59 }
 0x5a2   :  { %1633 = vtanh.f32 %v485_v4 }
 0x5af   :  { %v1634_v5 = vpop.eup %1633 }
 0x5b0   :  { %489 = vrot.lane.b32.xlu0 %v1634_v5, %s1720_s18 }
 0x622   :  { %v490_v7 = vpop.permute.xlu0 %489 }
 0x623   :  { %v492_v9 = vmul.f32 %v490_v7, %v487_v6 }
 0x625   :  { %v1904_v10 = vadd.f32 %v493_v8, %v492_v9 }
 0x627   :  { %535 = vrot.lane.b32.xlu1 %v1904_v10, %s1720_s18 }
 0x699   :  { %v536_v11 = vpop.permute.xlu1 %535 }
 0x69a   :  { %1554 = vmatmul.mubr.msk.f32.vlgmr.msra.gmra.mxu1 %vm150_vm5, %v536_v11 }
 0x69b   :  { %1568 = vmatpush3.msra.mxu1 %v1818_v21  ;;  %1575 = vmatprep.mubr.msk.f32.mxu1 %vm1717_vm4, %v1716_v13 }
 0x69c   :  { %1569 = vmatprep.subr.mxu1 %v1716_v13 }
 0x69d   :  { %1570 = vmatpush3.msra.mxu1 %v1825_v22 }
 0x69e   :  { %1571 = vmatprep.subr.mxu1 %v1716_v13 }
 0x69f   :  { %1572 = vmatpush3.msra.mxu1 %v1831_v23 }
 0x6a0   :  { %1573 = vmatprep.subr.mxu1 %v1716_v13 }
 0x6a1   :  { %1574 = vmatpush3.msra.mxu1 %v1838_v24 }
 0x6a2   :  { %1589 = vmatprep.subr.mxu1 %v1716_v13 }
 0x75a   :  { %v605_v12 = vpop.f32.mrf.mxu1 }
 0x75b   :  { %v616_v15 = vadd.f32 %v605_v12, %v1878_v34  ;;  %v609_v18 = vadd.f32 %v605_v12, %v534_v17 }
 0x75c   :  { %v1555_v16 = vpop.f32.mrf.mxu1 }
 0x75d   :  { %618 = vrot.lane.b32.xlu0 %v616_v15, %s1718_s16  ;;  %v1429_v19 = vmul.f32 -1.442695, %v609_v18 }
 0x75f   :  { %1635 = vpow2.f32 %v1429_v19 }
 0x76c   :  { %v1636_v20 = vpop.eup %1635 }
 0x76d   :  { %v613_v25 = vadd.f32 1.0, %v1636_v20 }
 0x76f   :  { %1637 = vrcp.f32 %v613_v25 }
 0x77c   :  { %v1638_v26 = vpop.eup %1637 }
 0x77d   :  { %v628_v32 = vsub.f32 1.0, %v1638_v26  ;;  %v634_v35 = vmul.f32 %v1638_v26, %v1904_v10 }
 0x7cf   :  { %v619_v27 = vpop.permute.xlu0 %618 }
 0x7d0   :  { %v621_v28 = vmul.f32 %v1638_v26, %v619_v27 }
 0x7d2   :  { %623 = vrot.lane.b32.xlu1 %v621_v28, %s1718_s16 }
 0x844   :  { %v624_v29 = vpop.permute.xlu1 %623 }
 0x845   :  { %v626_v30 = vadd.f32 %v624_v29, %v534_v17 }
 0x847   :  { %1639 = vtanh.f32 %v626_v30 }
 0x854   :  { %v1640_v31 = vpop.eup %1639 }
 0x855   :  { %630 = vrot.lane.b32.xlu0 %v1640_v31, %s1720_s18 }
 0x8c7   :  { %v631_v33 = vpop.permute.xlu0 %630 }
 0x8c8   :  { %v633_v36 = vmul.f32 %v631_v33, %v628_v32 }
 0x8ca   :  { %v1924_v37 = vadd.f32 %v634_v35, %v633_v36 }
 0x8cc   :  { %676 = vrot.lane.b32.xlu1 %v1924_v37, %s1720_s18 }
 0x93e   :  { %v677_v38 = vpop.permute.xlu1 %676 }
 0x93f   :  { %1565 = vmatmul.mubr.msk.f32.vlgmr.msra.gmra.mxu0 %vm150_vm5, %v677_v38 }
 0x940   :  { %1579 = vmatpush3.msra.mxu0 %v1818_v21  ;;  %1586 = vmatprep.mubr.msk.f32.mxu0 %vm1717_vm4, %v1716_v13 }
 0x941   :  { %1580 = vmatprep.subr.mxu0 %v1716_v13 }
 0x942   :  { %1581 = vmatpush3.msra.mxu0 %v1825_v22 }
 0x943   :  { %1582 = vmatprep.subr.mxu0 %v1716_v13 }
 0x944   :  { %1583 = vmatpush3.msra.mxu0 %v1831_v23 }
 0x945   :  { %1584 = vmatprep.subr.mxu0 %v1716_v13 }
 0x946   :  { %1585 = vmatpush3.msra.mxu0 %v1838_v24 }
 0x947   :  { %1600 = vmatprep.subr.mxu0 %v1716_v13 }
 0x9ff   :  { %v746_v39 = vpop.f32.mrf.mxu0 }
 0xa00   :  { %v757_v40 = vadd.f32 %v746_v39, %v1878_v34  ;;  %v750_v43 = vadd.f32 %v746_v39, %v675_v42 }
 0xa01   :  { %v1566_v41 = vpop.f32.mrf.mxu0 }
 0xa02   :  { %759 = vrot.lane.b32.xlu0 %v757_v40, %s1718_s16  ;;  %v1431_v44 = vmul.f32 -1.442695, %v750_v43  ;;  %v1098_v43 = vld [vmem:[#allocation2 + $0xc] sm:$0x3] }
 0xa04   :  { %1641 = vpow2.f32 %v1431_v44 }
 0xa11   :  { %v1642_v45 = vpop.eup %1641 }
 0xa12   :  { %v754_v46 = vadd.f32 1.0, %v1642_v45 }
 0xa14   :  { %1643 = vrcp.f32 %v754_v46 }
 0xa21   :  { %v1644_v47 = vpop.eup %1643 }
 0xa22   :  { %v769_v53 = vsub.f32 1.0, %v1644_v47  ;;  %v775_v56 = vmul.f32 %v1644_v47, %v1924_v37 }
 0xa74   :  { %v760_v48 = vpop.permute.xlu0 %759 }
 0xa75   :  { %v762_v49 = vmul.f32 %v1644_v47, %v760_v48 }
 0xa77   :  { %764 = vrot.lane.b32.xlu1 %v762_v49, %s1718_s16 }
 0xae9   :  { %v765_v50 = vpop.permute.xlu1 %764 }
 0xaea   :  { %v767_v51 = vadd.f32 %v765_v50, %v675_v42 }
 0xaec   :  { %1645 = vtanh.f32 %v767_v51 }
 0xaf9   :  { %v1646_v52 = vpop.eup %1645 }
 0xafa   :  { %771 = vrot.lane.b32.xlu0 %v1646_v52, %s1720_s18 }
 0xb6c   :  { %v772_v55 = vpop.permute.xlu0 %771 }
 0xb6d   :  { %v774_v57 = vmul.f32 %v772_v55, %v769_v53 }
 0xb6f   :  { %v1944_v58 = vadd.f32 %v775_v56, %v774_v57 }
 0xb71   :  { %817 = vrot.lane.b32.xlu1 %v1944_v58, %s1720_s18 }
 0xbe3   :  { %v818_v59 = vpop.permute.xlu1 %817 }
 0xbe4   :  { %1576 = vmatmul.mubr.msk.f32.vlgmr.msra.gmra.mxu1 %vm150_vm5, %v818_v59 }
 0xbe5   :  { %1590 = vmatpush3.msra.mxu1 %v1818_v21  ;;  %1597 = vmatprep.mubr.msk.f32.mxu1 %vm1717_vm4, %v1716_v13 }
 0xbe6   :  { %1591 = vmatprep.subr.mxu1 %v1716_v13 }
 0xbe7   :  { %1592 = vmatpush3.msra.mxu1 %v1825_v22 }
 0xbe8   :  { %1593 = vmatprep.subr.mxu1 %v1716_v13 }
 0xbe9   :  { %1594 = vmatpush3.msra.mxu1 %v1831_v23 }
 0xbea   :  { %1595 = vmatprep.subr.mxu1 %v1716_v13 }
 0xbeb   :  { %1596 = vmatpush3.msra.mxu1 %v1838_v24 }
 0xca4   :  { %v887_v60 = vpop.f32.mrf.mxu1 }
 0xca5   :  { %v898_v61 = vadd.f32 %v887_v60, %v1878_v34  ;;  %v891_v0 = vadd.f32 %v887_v60, %v816_v63 }
 0xca6   :  { %v1577_v62 = vpop.f32.mrf.mxu1 }
 0xca7   :  { %900 = vrot.lane.b32.xlu0 %v898_v61, %s1718_s16  ;;  %v1433_v1 = vmul.f32 -1.442695, %v891_v0 }
 0xca9   :  { %1647 = vpow2.f32 %v1433_v1  ;;  %v1239_v1 = vld [vmem:[#allocation2 + $0xe] sm:$0x3] }
 0xcb6   :  { %v1648_v2 = vpop.eup %1647 }
 0xcb7   :  { %v895_v3 = vadd.f32 1.0, %v1648_v2 }
 0xcb9   :  { %1649 = vrcp.f32 %v895_v3 }
 0xcc6   :  { %v1650_v4 = vpop.eup %1649 }
 0xcc7   :  { %v910_v11 = vsub.f32 1.0, %v1650_v4  ;;  %v916_v15 = vmul.f32 %v1650_v4, %v1944_v58 }
 0xd19   :  { %v901_v5 = vpop.permute.xlu0 %900 }
 0xd1a   :  { %v903_v6 = vmul.f32 %v1650_v4, %v901_v5 }
 0xd1c   :  { %905 = vrot.lane.b32.xlu1 %v903_v6, %s1718_s16  ;;  %v1721_v6 = vmov 1966171168  }
 0xd8e   :  { %v906_v7 = vpop.permute.xlu1 %905 }
 0xd8f   :  { %v908_v8 = vadd.f32 %v906_v7, %v816_v63  ;;  %v355_v7 = vunpack.c.l.s4 %v1721_v6 }
 0xd91   :  { %1651 = vtanh.f32 %v908_v8  ;;  %v356_v8 = vunpack.c.0.s8 %v355_v7 }
 0xd9e   :  { %v1652_v9 = vpop.eup %1651 }
 0xd9f   :  { %912 = vrot.lane.b32.xlu0 %v1652_v9, %s1720_s18  ;;  %v358_v9 = vshrl.u32 %v32_v14, 7 }
 0xe11   :  { %v913_v12 = vpop.permute.xlu0 %912 }
 0xe12   :  { %v915_v16 = vmul.f32 %v913_v12, %v910_v11  ;;  %v2000_v11 = vsub.s32 %v356_v8, %v358_v9 }
 0xe14   :  { %v1963_v17 = vadd.f32 %v916_v15, %v915_v16  ;;  %v2006_v16 = vsub.s32 0, %v358_v9  ;;  %v643_v14 = vrot.slane %v1924_v37, %v2000_v11 }
 0xe16   :  { %958 = vrot.lane.b32.xlu1 %v1963_v17, %s1720_s18 }
 0xe88   :  { %v959_v18 = vpop.permute.xlu1 %958 }
 0xe89   :  { %1587 = vmatmul.mubr.msk.f32.vlgmr.msra.gmra.mxu0 %vm150_vm5, %v959_v18  ;;  %v502_v18 = vrot.slane %v1904_v10, %v2000_v11 }
 0xe8a   :  { %1601 = vmatpush3.msra.mxu0 %v1818_v21  ;;  %1608 = vmatprep.mubr.msk.f32.mxu0 %vm1717_vm4, %v1716_v13  ;;  %v957_v21 = vld [vmem:[#allocation2 + $0xa] sm:$0x3] }
 0xe8b   :  { %1602 = vmatprep.subr.mxu0 %v1716_v13 }
 0xe8c   :  { %1603 = vmatpush3.msra.mxu0 %v1825_v22 }
 0xe8d   :  { %1604 = vmatprep.subr.mxu0 %v1716_v13 }
 0xe8e   :  { %1605 = vmatpush3.msra.mxu0 %v1831_v23 }
 0xe8f   :  { %1606 = vmatprep.subr.mxu0 %v1716_v13 }
 0xe90   :  { %1607 = vmatpush3.msra.mxu0 %v1838_v24 }
 0xf49   :  { %v1028_v19 = vpop.f32.mrf.mxu0 }
 0xf4a   :  { %v1039_v20 = vadd.f32 %v1028_v19, %v1878_v34  ;;  %v1032_v26 = vadd.f32 %v1028_v19, %v957_v21 }
 0xf4b   :  { %v1588_v25 = vpop.f32.mrf.mxu0 }
 0xf4c   :  { %1041 = vrot.lane.b32.xlu0 %v1039_v20, %s1718_s16  ;;  %v1435_v27 = vmul.f32 -1.442695, %v1032_v26  ;;  %v651_v26 = vrot.slane %v643_v14, %v2000_v11 }
 0xf4e   :  { %1653 = vpow2.f32 %v1435_v27  ;;  %v925_v27 = vrot.slane %v1963_v17, %v2000_v11  ;;  %v662_v37 = vrot.slane %v651_v26, %v2006_v16 }
 0xf5b   :  { %v1654_v28 = vpop.eup %1653 }
 0xf5c   :  { %v1036_v22 = vadd.f32 1.0, %v1654_v28 }
 0xf5e   :  { %1655 = vrcp.f32 %v1036_v22 }
 0xf6b   :  { %v1656_v29 = vpop.eup %1655 }
 0xf6c   :  { %v1051_v32 = vsub.f32 1.0, %v1656_v29  ;;  %v1057_v35 = vmul.f32 %v1656_v29, %v1963_v17 }
 0xfbe   :  { %v1042_v30 = vpop.permute.xlu0 %1041 }
 0xfbf   :  { %v1044_v23 = vmul.f32 %v1656_v29, %v1042_v30  ;;  %v933_v29 = vrot.slane %v925_v27, %v2000_v11 }
 0xfc1   :  { %1046 = vrot.lane.b32.xlu1 %v1044_v23, %s1718_s16  ;;  %v944_v17 = vrot.slane %v933_v29, %v2006_v16 }
0x1033   :  { %v1047_v13 = vpop.permute.xlu1 %1046 }
0x1034   :  { %v1049_v24 = vadd.f32 %v1047_v13, %v957_v21  ;;  %v784_v21 = vrot.slane %v1944_v58, %v2000_v11 }
0x1036   :  { %1657 = vtanh.f32 %v1049_v24  ;;  %v792_v28 = vrot.slane %v784_v21, %v2000_v11 }
0x1038   :  { %v803_v58 = vrot.slane %v792_v28, %v2006_v16 }
0x1043   :  { %v1658_v31 = vpop.eup %1657 }
0x1044   :  { %1053 = vrot.lane.b32.xlu0 %v1658_v31, %s1720_s18 }
0x10b6   :  { %v1054_v33 = vpop.permute.xlu0 %1053 }
0x10b7   :  { %v1056_v36 = vmul.f32 %v1054_v33, %v1051_v32 }
0x10b9   :  { %v1982_v38 = vadd.f32 %v1057_v35, %v1056_v36 }
0x10bb   :  { %1099 = vrot.lane.b32.xlu1 %v1982_v38, %s1720_s18  ;;  %v1066_v22 = vrot.slane %v1982_v38, %v2000_v11 }
0x10bd   :  { %v1074_v23 = vrot.slane %v1066_v22, %v2000_v11 }
0x10bf   :  { %v1085_v13 = vrot.slane %v1074_v23, %v2006_v16 }
0x112d   :  { %v1100_v39 = vpop.permute.xlu1 %1099 }
0x112e   :  { %1598 = vmatmul.mubr.msk.f32.vlgmr.msra.gmra.mxu1 %vm150_vm5, %v1100_v39 }
0x11ee   :  { %v1169_v40 = vpop.f32.mrf.mxu1 }
0x11ef   :  { %v1180_v41 = vadd.f32 %v1169_v40, %v1878_v34  ;;  %v1173_v44 = vadd.f32 %v1169_v40, %v1098_v43 }
0x11f0   :  { %v1599_v42 = vpop.f32.mrf.mxu1 }
0x11f1   :  { %1182 = vrot.lane.b32.xlu0 %v1180_v41, %s1718_s16  ;;  %v1437_v45 = vmul.f32 -1.442695, %v1173_v44  ;;  %v503_v41 = vcombine.high %v502_v18, %v502_v18 }
0x11f3   :  { %1659 = vpow2.f32 %v1437_v45  ;;  %v517_v45 = vrot.slane %v503_v41, %v2000_v11 }
0x1200   :  { %v1660_v46 = vpop.eup %1659 }
0x1201   :  { %v1177_v47 = vadd.f32 1.0, %v1660_v46  ;;  %v644_v46 = vcombine.high %v643_v14, %v643_v14 }
0x1203   :  { %1661 = vrcp.f32 %v1177_v47 }
0x1210   :  { %v1662_v48 = vpop.eup %1661 }
0x1211   :  { %v1192_v55 = vsub.f32 1.0, %v1662_v48  ;;  %v1198_v57 = vmul.f32 %v1662_v48, %v1982_v38 }
0x1263   :  { %v1183_v49 = vpop.permute.xlu0 %1182 }
0x1264   :  { %v1185_v50 = vmul.f32 %v1662_v48, %v1183_v49  ;;  %v525_v48 = vrot.slane %v517_v45, %v2006_v16  ;;  %v658_v49 = vrot.slane %v644_v46, %v2000_v11 }
0x1266   :  { %1187 = vrot.lane.b32.xlu1 %v1185_v50, %s1718_s16  ;;  %v785_v50 = vcombine.high %v784_v21, %v784_v21 }
0x12d8   :  { %v1188_v51 = vpop.permute.xlu1 %1187 }
0x12d9   :  { %v1190_v52 = vadd.f32 %v1188_v51, %v1098_v43 }
0x12db   :  { %1663 = vtanh.f32 %v1190_v52  ;;  %v666_v52 = vrot.slane %v658_v49, %v2006_v16 }
0x12e8   :  { %v1664_v53 = vpop.eup %1663 }
0x12e9   :  { %1194 = vrot.lane.b32.xlu0 %v1664_v53, %s1720_s18  ;;  %v799_v53 = vrot.slane %v785_v50, %v2000_v11 }
0x135b   :  { %v1195_v56 = vpop.permute.xlu0 %1194 }
0x135c   :  { %v1197_v59 = vmul.f32 %v1195_v56, %v1192_v55  ;;  %v926_v55 = vcombine.high %v925_v27, %v925_v27 }
0x135e   :  { %v1992_v60 = vadd.f32 %v1198_v57, %v1197_v59  ;;  %v807_v57 = vrot.slane %v799_v53, %v2006_v16  ;;  %v940_v59 = vrot.slane %v926_v55, %v2000_v11 }
0x1360   :  { %1240 = vrot.lane.b32.xlu1 %v1992_v60, %s1720_s18  ;;  %v1207_v30 = vrot.slane %v1992_v60, %v2000_v11 }
0x1362   :  { %v1215_v24 = vrot.slane %v1207_v30, %v2000_v11 }
0x1364   :  { %v1226_v31 = vrot.slane %v1215_v24, %v2006_v16 }
0x13d2   :  { %v1241_v61 = vpop.permute.xlu1 %1240 }
0x13d3   :  { %1609 = vmatmul.mubr.msk.f32.vlgmr.msra.gmra.mxu0 %vm150_vm5, %v1241_v61  ;;  %v1067_v61 = vcombine.high %v1066_v22, %v1066_v22 }
0x1493   :  { %v1310_v62 = vpop.f32.mrf.mxu0 }
0x1494   :  { %v1321_v63 = vadd.f32 %v1310_v62, %v1878_v34  ;;  %v1314_v2 = vadd.f32 %v1310_v62, %v1239_v1  ;;  %v360_v34 = vrot.slane %v1884_v54, %v2000_v11  ;;  %v510_v54 = vrot.slane %v502_v18, %v2000_v11 }
0x1495   :  { %v1610_v0 = vpop.f32.mrf.mxu0  ;;  %v948_v62 = vrot.slane %v940_v59, %v2006_v16 }
0x1496   :  { %1323 = vrot.lane.b32.xlu0 %v1321_v63, %s1718_s16  ;;  %v1439_v3 = vmul.f32 -1.442695, %v1314_v2  ;;  %v368_v20 = vrot.slane %v360_v34, %v2000_v11  ;;  %v521_v10 = vrot.slane %v510_v54, %v2006_v16  ;;  %v361_v38 = vcombine.high %v360_v34, %v360_v34 }
0x1497   :  { %v1081_v63 = vrot.slane %v1067_v61, %v2000_v11  ;;  %v1208_v0 = vcombine.high %v1207_v30, %v1207_v30 }
0x1498   :  { %1665 = vpow2.f32 %v1439_v3  ;;  %v379_v25 = vrot.slane %v368_v20, %v2006_v16  ;;  %v375_v40 = vrot.slane %v361_v38, %v2000_v11 }
0x1499   :  { %v1222_v2 = vrot.slane %v1208_v0, %v2000_v11 }
0x149a   :  { %v383_v44 = vrot.slane %v375_v40, %v2006_v16 }
0x149b   :  { %v1230_v3 = vrot.slane %v1222_v2, %v2006_v16 }
0x14a5   :  { %v1666_v4 = vpop.eup %1665 }
0x14a6   :  { %v1318_v5 = vadd.f32 1.0, %v1666_v4 }
0x14a8   :  { %1667 = vrcp.f32 %v1318_v5 }
0x14b5   :  { %v2004_v12 = vpop.eup %1667 }
0x14b6   :  { %v1333_v4 = vsub.f32 1.0, %v2004_v12  ;;  %v1339_v6 = vmul.f32 %v2004_v12, %v1992_v60 }
0x1508   :  { %v1324_v15 = vpop.permute.xlu0 %1323 }
0x1509   :  { %v1326_v19 = vmul.f32 %v2004_v12, %v1324_v15 }
0x150b   :  { %1328 = vrot.lane.b32.xlu1 %v1326_v19, %s1718_s16 }
0x150f   :  { %384 = vrot.lane.b32.xlu1 %v379_v25, %s1720_s18 }
0x1513   :  { %526 = vrot.lane.b32.xlu1 %v521_v10, %s1720_s18 }
0x1517   :  { %667 = vrot.lane.b32.xlu1 %v662_v37, %s1720_s18 }
0x151b   :  { %808 = vrot.lane.b32.xlu1 %v803_v58, %s1720_s18 }
0x151f   :  { %949 = vrot.lane.b32.xlu1 %v944_v17, %s1720_s18 }
0x1523   :  { %1090 = vrot.lane.b32.xlu1 %v1085_v13, %s1720_s18 }
0x1527   :  { %1231 = vrot.lane.b32.xlu1 %v1226_v31, %s1720_s18 }
0x157d   :  { %v1329_v32 = vpop.permute.xlu1 %1328 }
0x157e   :  { %v1331_v33 = vadd.f32 %v1329_v32, %v1239_v1  ;;  %v1089_v1 = vrot.slane %v1081_v63, %v2006_v16 }
0x1580   :  { %1669 = vtanh.f32 %v1331_v33 }
0x1581   :  { %v385_v35 = vpop.permute.xlu1 %384 }
0x1582   :  { %391 = vst.msk [vmem:[#allocation3] sm:$0x1] %vm390_vm7, %v385_v35 }
0x1585   :  { %v527_v36 = vpop.permute.xlu1 %526 }
0x1586   :  { %532 = vst.msk [vmem:[#allocation3 + $0x1] sm:$0x1] %vm390_vm7, %v527_v36 }
0x1589   :  { %v668_v39 = vpop.permute.xlu1 %667 }
0x158a   :  { %673 = vst.msk [vmem:[#allocation3 + $0x2] sm:$0x1] %vm390_vm7, %v668_v39 }
0x158d   :  { %v1670_v42 = vpop.eup %1669  ;;  %v809_v43 = vpop.permute.xlu1 %808 }
0x158e   :  { %814 = vst.msk [vmem:[#allocation3 + $0x3] sm:$0x1] %vm390_vm7, %v809_v43  ;;  %1335 = vrot.lane.b32.xlu0 %v1670_v42, %s1720_s18 }
0x1591   :  { %v950_v47 = vpop.permute.xlu1 %949 }
0x1592   :  { %955 = vst.msk [vmem:[#allocation3 + $0x4] sm:$0x1] %vm390_vm7, %v950_v47  ;;  %386 = vrot.lane.b32.xlu0 %v383_v44, %s1720_s18 }
0x1595   :  { %v1091_v51 = vpop.permute.xlu1 %1090 }
0x1596   :  { %1096 = vst.msk [vmem:[#allocation3 + $0x5] sm:$0x1] %vm390_vm7, %v1091_v51  ;;  %528 = vrot.lane.b32.xlu0 %v525_v48, %s1720_s18 }
0x1599   :  { %v1232_v56 = vpop.permute.xlu1 %1231 }
0x159a   :  { %1237 = vst.msk [vmem:[#allocation3 + $0x6] sm:$0x1] %vm390_vm7, %v1232_v56  ;;  %669 = vrot.lane.b32.xlu0 %v666_v52, %s1720_s18 }
0x159e   :  { %810 = vrot.lane.b32.xlu0 %v807_v57, %s1720_s18 }
0x15a2   :  { %951 = vrot.lane.b32.xlu0 %v948_v62, %s1720_s18 }
0x15a6   :  { %1092 = vrot.lane.b32.xlu0 %v1089_v1, %s1720_s18 }
0x15aa   :  { %1233 = vrot.lane.b32.xlu0 %v1230_v3, %s1720_s18 }
0x1600   :  { %v1336_v5 = vpop.permute.xlu0 %1335 }
0x1601   :  { %v1338_v7 = vmul.f32 %v1336_v5, %v1333_v4 }
0x1603   :  { %v1340_v8 = vadd.f32 %v1339_v6, %v1338_v7 }
0x1604   :  { %v387_v9 = vpop.permute.xlu0 %386 }
0x1605   :  { %v1348_v34 = vrot.slane %v1340_v8, %v2000_v11  ;;  %392 = vst.msk [vmem:[#allocation3 + $0x8] sm:$0x1] %vm390_vm7, %v387_v9 }
0x1607   :  { %v1349_v15 = vcombine.high %v1348_v34, %v1348_v34  ;;  %v1356_v18 = vrot.slane %v1348_v34, %v2000_v11 }
0x1608   :  { %v529_v19 = vpop.permute.xlu0 %528 }
0x1609   :  { %533 = vst.msk [vmem:[#allocation3 + $0x9] sm:$0x1] %vm390_vm7, %v529_v19  ;;  %v1367_v20 = vrot.slane %v1356_v18, %v2006_v16  ;;  %v1363_v14 = vrot.slane %v1349_v15, %v2000_v11 }
0x160b   :  { %1372 = vrot.lane.b32.xlu1 %v1367_v20, %s1720_s18  ;;  %v1371_v60 = vrot.slane %v1363_v14, %v2006_v16 }
0x160c   :  { %v670_v12 = vpop.permute.xlu0 %669 }
0x160d   :  { %674 = vst.msk [vmem:[#allocation3 + $0xa] sm:$0x1] %vm390_vm7, %v670_v12  ;;  %1374 = vrot.lane.b32.xlu0 %v1371_v60, %s1720_s18 }
0x160f   :  { %1380 = vrot.lane.b32.xlu1 %v1340_v8, %s1720_s18 }
0x1610   :  { %v811_v25 = vpop.permute.xlu0 %810 }
0x1611   :  { %815 = vst.msk [vmem:[#allocation3 + $0xb] sm:$0x1] %vm390_vm7, %v811_v25 }
0x1614   :  { %v952_v54 = vpop.permute.xlu0 %951 }
0x1615   :  { %956 = vst.msk [vmem:[#allocation3 + $0xc] sm:$0x1] %vm390_vm7, %v952_v54 }
0x1618   :  { %v1093_v21 = vpop.permute.xlu0 %1092 }
0x1619   :  { %1097 = vst.msk [vmem:[#allocation3 + $0xd] sm:$0x1] %vm390_vm7, %v1093_v21 }
0x161c   :  { %v1234_v11 = vpop.permute.xlu0 %1233 }
0x161d   :  { %1238 = vst.msk [vmem:[#allocation3 + $0xe] sm:$0x1] %vm390_vm7, %v1234_v11 }
0x167d   :  { %v1373_v16 = vpop.permute.xlu1 %1372 }
0x167e   :  { %1378 = vst.msk [vmem:[#allocation3 + $0x7] sm:$0x1] %vm390_vm7, %v1373_v16 }
0x167f   :  { %v1375_v10 = vpop.permute.xlu0 %1374 }
0x1680   :  { %1379 = vst.msk [vmem:[#allocation3 + $0xf] sm:$0x1] %vm390_vm7, %v1375_v10 }
0x1681   :  { %v1381_v26 = vpop.permute.xlu1 %1380 }
0x1682   :  { %1682 = shalt.err (!%p1679_p4)
}
0x1683   :  { %s1724_s23 = smov 128   ;;  %s1725_s24 = smov 8   ;;  %1384 = vst.msk [vmem:[#allocation5] sm:$0x3] %vm1383_vm8, %v1381_v26 }
0x1684   :  { %1396 = dma.vmem_to_hbm [thread:$0]  %s1391_s20, 256, %s2105_s7, [#allocation4], %s1724_s23, %s1724_s23, %s1725_s24  }
0x1685   :  { %s1691_s27 = scalar_lea.vmem %s1404_s21, 32  ;;  %p1696_p6 = scmp.lt.s32.totalorder %s1404_s21, %s1404_s21 }
0x1686   :  { %p1692_p5 = scmp.ne.s32.totalorder %s1404_s21, %s1691_s27  ;;  %p1697_p7 = scmp.lt.s32.totalorder %s1691_s27, %s1691_s27 }
0x1688   :  { %p1698_p8 = por %p1697_p7, %p1696_p6 }
0x168a   :  { %p1699_p9 = pnand %p1698_p8, %p1692_p5 }
0x168c   :  { %1702 = shalt.err (!%p1699_p9)
}
0x168d   :  { %1406 = dma.vmem_to_hbm [thread:$0]  %s1404_s21, 32, %s2106_s8, [#allocation6]  }
0x168e   :  { %1711 = dma.done.wait [#allocation4], 256  }
0x168f   :  { %1712 = vsyncadd [#allocation4], 4294967040 }
0x1690   :  { %1713 = dma.done.wait [#allocation6], 32  }
0x1691   :  { %1714 = vsyncadd [#allocation6], 4294967264 }
0x1692   :  { %1413 = vsyncpa [#allocation4], 1 }
0x1693   :  { %1414 = vsyncpa [#allocation6], 1 }

</bundles_post_ra>
